<compile_context>
chip_gen: v7x
topology: tpu7x:2x2x1
jax: 0.10.0
libtpu: 0.0.40
codegen_flags: <defaults>
</compile_context>

<pallas_src>
import jax
import jax.numpy as jnp
from jax import lax
from jax.experimental import pallas as pl
from jax.experimental.pallas import tpu as pltpu

SUBLANE_F32 = 8   # f32 packs 8 rows per vreg; batch tiles are multiples of this


def _round_up(x, m):
    return ((x + m - 1) // m) * m


def mlp_kernel(x_ref, w1_ref, b1_ref, w2_ref, b2_ref, w3_ref, b3_ref, o_ref):
    # Fully fused fc1 -> relu -> fc2 -> relu -> fc3 on one (bm, F) row tile.
    # All f32; MXU matmuls at HIGHEST precision (kernel is mem-bound, MXU slack
    # is huge, so exactness is free).
    x = x_ref[...]

    h1 = jnp.dot(x, w1_ref[...],
                 preferred_element_type=jnp.float32,
                 precision=lax.Precision.HIGHEST) + b1_ref[...]
    h1 = jnp.maximum(h1, 0.0)

    h2 = jnp.dot(h1, w2_ref[...],
                 preferred_element_type=jnp.float32,
                 precision=lax.Precision.HIGHEST) + b2_ref[...]
    h2 = jnp.maximum(h2, 0.0)

    out = jnp.dot(h2, w3_ref[...],
                  preferred_element_type=jnp.float32,
                  precision=lax.Precision.HIGHEST) + b3_ref[...]
    o_ref[...] = out  # (bm, num_outputs) store (masked vst is fine: tiny writeback)


def _pick_bm(B, block_b):
    """Batch tile size: one tile for tiny batches; otherwise >=2 tiles so both
    v7x TensorCores get work, capped at block_b (multiple of 8)."""
    if B <= 2 * SUBLANE_F32:
        return _round_up(B, SUBLANE_F32)
    two_way = _round_up(pl.cdiv(B, 2), SUBLANE_F32)
    return min(block_b, two_way)


def combined_geolocation_cnn(features, params, *, block_b=2048):
    """features: (B, feature_size) f32. params: (w1,b1,w2,b2,w3,b3) with weights
    pre-transposed to (in, out) and biases shaped (1, out).
    Returns (B, num_outputs) f32 matching the PyTorch f32 forward."""
    w1, b1, w2, b2, w3, b3 = params
    B, F = features.shape
    F1, H1 = w1.shape
    H2 = w2.shape[1]
    Op = w3.shape[1]
    assert F == F1

    bm = _pick_bm(B, block_b)
    grid = (pl.cdiv(B, bm),)

    # VMEM per step: (bm,F)+(bm,Op) f32 double-buffered + weights -> well under
    # even v5e's 16 MiB default scoped VMEM at bm=2048, so no vmem_limit needed.
    out = pl.pallas_call(
        mlp_kernel,
        out_shape=jax.ShapeDtypeStruct((B, Op), jnp.float32),
        grid=grid,
        in_specs=[
            pl.BlockSpec((bm, F), lambda i: (i, 0)),    # activations: tiled over batch
            pl.BlockSpec((F, H1), lambda i: (0, 0)),    # weights/biases: VMEM-resident
            pl.BlockSpec((1, H1), lambda i: (0, 0)),
            pl.BlockSpec((H1, H2), lambda i: (0, 0)),
            pl.BlockSpec((1, H2), lambda i: (0, 0)),
            pl.BlockSpec((H2, Op), lambda i: (0, 0)),
            pl.BlockSpec((1, Op), lambda i: (0, 0)),
        ],
        out_specs=pl.BlockSpec((bm, Op), lambda i: (i, 0)),
        compiler_params=pltpu.CompilerParams(
            dimension_semantics=("parallel",)),  # shards batch tiles across v7x's 2 TCs
    )(features, w1, b1, w2, b2, w3, b3)

    return out


def init_params(key, feature_size, hidden_size1, hidden_size2, num_outputs):
    """Raw f32 params matching nn.Linear init. Weights stored pre-transposed (in, out)."""
    ks = jax.random.split(key, 6)

    def layer(kw, kb, fan_in, fan_out):
        bound = 1.0 / jnp.sqrt(jnp.float32(fan_in))
        w = jax.random.uniform(kw, (fan_in, fan_out), jnp.float32, -bound, bound)
        b = jax.random.uniform(kb, (1, fan_out), jnp.float32, -bound, bound)
        return w, b

    w1, b1 = layer(ks[0], ks[1], feature_size, hidden_size1)
    w2, b2 = layer(ks[2], ks[3], hidden_size1, hidden_size2)
    w3, b3 = layer(ks[4], ks[5], hidden_size2, num_outputs)
    return (w1, b1, w2, b2, w3, b3)


if __name__ == "__main__":
    feature_size, hidden_size1, hidden_size2, num_outputs = 32, 64, 32, 2
    batch = 8

    key = jax.random.PRNGKey(0)
    k_x, k_p = jax.random.split(key)

    features = jax.random.normal(k_x, (batch, feature_size), jnp.float32)
    params = init_params(k_p, feature_size, hidden_size1, hidden_size2, num_outputs)

    out = combined_geolocation_cnn(features, params)
    out = jax.block_until_ready(out)

    # Pure-JAX reference at highest matmul precision (matches the kernel's f32 path).
    w1, b1, w2, b2, w3, b3 = params
    with jax.default_matmul_precision("highest"):
        ref = jnp.maximum(features @ w1 + b1, 0.0)
        ref = jnp.maximum(ref @ w2 + b2, 0.0)
        ref = ref @ w3 + b3

    assert out.shape == (batch, num_outputs)
    # Loose tolerance only to stay robust across MXU precision modes; observed
    # error with HIGHEST-precision matmuls is ~1e-6.
    assert jnp.allclose(out, ref, atol=2e-2, rtol=2e-2), "kernel mismatch vs reference"

    print("KERNEL_OK")
</pallas_src>

<mosaic_0001>
module attributes {stable_mosaic.version = 11 : i64} {
  func.func @mlp_kernel(%arg0: i32, %arg1: memref<8x32xf32, #tpu.memory_space<vmem>>, %arg2: memref<32x64xf32, #tpu.memory_space<vmem>>, %arg3: memref<1x64xf32, #tpu.memory_space<vmem>>, %arg4: memref<64x32xf32, #tpu.memory_space<vmem>>, %arg5: memref<1x32xf32, #tpu.memory_space<vmem>>, %arg6: memref<32x2xf32, #tpu.memory_space<vmem>>, %arg7: memref<1x2xf32, #tpu.memory_space<vmem>>, %arg8: memref<8x2xf32, #tpu.memory_space<vmem>>) attributes {dimension_semantics = [#tpu.dimension_semantics<parallel>], iteration_bounds = array<i64: 1>, scalar_prefetch = 0 : i64, scratch_operands = 0 : i64, tpu.core_type = #tpu.core_type<tc>, window_params = [{transform_indices = @transform_0, window_bounds = array<i64: 8, 32>}, {pipeline_mode = #tpu.pipeline_mode<synchronous>, transform_indices = @transform_1, window_bounds = array<i64: 32, 64>}, {pipeline_mode = #tpu.pipeline_mode<synchronous>, transform_indices = @transform_2, window_bounds = array<i64: 1, 64>}, {pipeline_mode = #tpu.pipeline_mode<synchronous>, transform_indices = @transform_3, window_bounds = array<i64: 64, 32>}, {pipeline_mode = #tpu.pipeline_mode<synchronous>, transform_indices = @transform_4, window_bounds = array<i64: 1, 32>}, {pipeline_mode = #tpu.pipeline_mode<synchronous>, transform_indices = @transform_5, window_bounds = array<i64: 32, 2>}, {pipeline_mode = #tpu.pipeline_mode<synchronous>, transform_indices = @transform_6, window_bounds = array<i64: 1, 2>}, {transform_indices = @transform_7, window_bounds = array<i64: 8, 2>}]} {
    %c0 = arith.constant 0 : index
    %c0_0 = arith.constant 0 : index
    %0 = vector.load %arg1[%c0, %c0_0] : memref<8x32xf32, #tpu.memory_space<vmem>>, vector<8x32xf32>
    %c0_1 = arith.constant 0 : index
    %c0_2 = arith.constant 0 : index
    %1 = vector.load %arg2[%c0_1, %c0_2] : memref<32x64xf32, #tpu.memory_space<vmem>>, vector<32x64xf32>
    %cst = arith.constant dense<0.000000e+00> : vector<8x64xf32>
    %2 = tpu.matmul %0, %1, %cst {dimension_numbers = #tpu.dot_dimension_numbers<[1], [0], [0], [1], [0, 0, 1, 1], [], []>, precision = #tpu.contract_precision<fp32>} : vector<8x32xf32>, vector<32x64xf32>, vector<8x64xf32> -> vector<8x64xf32>
    %c0_3 = arith.constant 0 : index
    %c0_4 = arith.constant 0 : index
    %3 = vector.load %arg3[%c0_3, %c0_4] : memref<1x64xf32, #tpu.memory_space<vmem>>, vector<1x64xf32>
    %4 = vector.broadcast %3 : vector<1x64xf32> to vector<8x64xf32>
    %5 = arith.addf %2, %4 : vector<8x64xf32>
    %cst_5 = arith.constant 0.000000e+00 : f32
    %6 = vector.broadcast %cst_5 : f32 to vector<8x64xf32>
    %7 = arith.maximumf %5, %6 : vector<8x64xf32>
    %c0_6 = arith.constant 0 : index
    %c0_7 = arith.constant 0 : index
    %8 = vector.load %arg4[%c0_6, %c0_7] : memref<64x32xf32, #tpu.memory_space<vmem>>, vector<64x32xf32>
    %cst_8 = arith.constant dense<0.000000e+00> : vector<8x32xf32>
    %9 = tpu.matmul %7, %8, %cst_8 {dimension_numbers = #tpu.dot_dimension_numbers<[1], [0], [0], [1], [0, 0, 1, 1], [], []>, precision = #tpu.contract_precision<fp32>} : vector<8x64xf32>, vector<64x32xf32>, vector<8x32xf32> -> vector<8x32xf32>
    %c0_9 = arith.constant 0 : index
    %c0_10 = arith.constant 0 : index
    %10 = vector.load %arg5[%c0_9, %c0_10] : memref<1x32xf32, #tpu.memory_space<vmem>>, vector<1x32xf32>
    %11 = vector.broadcast %10 : vector<1x32xf32> to vector<8x32xf32>
    %12 = arith.addf %9, %11 : vector<8x32xf32>
    %cst_11 = arith.constant 0.000000e+00 : f32
    %13 = vector.broadcast %cst_11 : f32 to vector<8x32xf32>
    %14 = arith.maximumf %12, %13 : vector<8x32xf32>
    %c0_12 = arith.constant 0 : index
    %c0_13 = arith.constant 0 : index
    %15 = vector.load %arg6[%c0_12, %c0_13] : memref<32x2xf32, #tpu.memory_space<vmem>>, vector<32x2xf32>
    %cst_14 = arith.constant dense<0.000000e+00> : vector<8x2xf32>
    %16 = tpu.matmul %14, %15, %cst_14 {dimension_numbers = #tpu.dot_dimension_numbers<[1], [0], [0], [1], [0, 0, 1, 1], [], []>, precision = #tpu.contract_precision<fp32>} : vector<8x32xf32>, vector<32x2xf32>, vector<8x2xf32> -> vector<8x2xf32>
    %c0_15 = arith.constant 0 : index
    %c0_16 = arith.constant 0 : index
    %17 = vector.load %arg7[%c0_15, %c0_16] : memref<1x2xf32, #tpu.memory_space<vmem>>, vector<1x2xf32>
    %18 = vector.broadcast %17 : vector<1x2xf32> to vector<8x2xf32>
    %19 = arith.addf %16, %18 : vector<8x2xf32>
    %c0_17 = arith.constant 0 : index
    %c0_18 = arith.constant 0 : index
    %20 = vector.load %arg8[%c0_17, %c0_18] : memref<8x2xf32, #tpu.memory_space<vmem>>, vector<8x2xf32>
    tpu.vector_store %arg8[%c0_17, %c0_18], %19 {strides = array<i32>} : memref<8x2xf32, #tpu.memory_space<vmem>>, vector<8x2xf32>,
    return
  }
  func.func @transform_0(%arg0: i32) -> (i32, i32) {
    %c0_i32 = arith.constant 0 : i32
    %c0_i32_0 = arith.constant 0 : i32
    return %arg0, %c0_i32 : i32, i32
  }
  func.func @transform_1(%arg0: i32) -> (i32, i32) {
    %c0_i32 = arith.constant 0 : i32
    %c0_i32_0 = arith.constant 0 : i32
    %c0_i32_1 = arith.constant 0 : i32
    return %c0_i32, %c0_i32_0 : i32, i32
  }
  func.func @transform_2(%arg0: i32) -> (i32, i32) {
    %c0_i32 = arith.constant 0 : i32
    %c0_i32_0 = arith.constant 0 : i32
    %c0_i32_1 = arith.constant 0 : i32
    return %c0_i32, %c0_i32_0 : i32, i32
  }
  func.func @transform_3(%arg0: i32) -> (i32, i32) {
    %c0_i32 = arith.constant 0 : i32
    %c0_i32_0 = arith.constant 0 : i32
    %c0_i32_1 = arith.constant 0 : i32
    return %c0_i32, %c0_i32_0 : i32, i32
  }
  func.func @transform_4(%arg0: i32) -> (i32, i32) {
    %c0_i32 = arith.constant 0 : i32
    %c0_i32_0 = arith.constant 0 : i32
    %c0_i32_1 = arith.constant 0 : i32
    return %c0_i32, %c0_i32_0 : i32, i32
  }
  func.func @transform_5(%arg0: i32) -> (i32, i32) {
    %c0_i32 = arith.constant 0 : i32
    %c0_i32_0 = arith.constant 0 : i32
    %c0_i32_1 = arith.constant 0 : i32
    return %c0_i32, %c0_i32_0 : i32, i32
  }
  func.func @transform_6(%arg0: i32) -> (i32, i32) {
    %c0_i32 = arith.constant 0 : i32
    %c0_i32_0 = arith.constant 0 : i32
    %c0_i32_1 = arith.constant 0 : i32
    return %c0_i32, %c0_i32_0 : i32, i32
  }
  func.func @transform_7(%arg0: i32) -> (i32, i32) {
    %c0_i32 = arith.constant 0 : i32
    %c0_i32_0 = arith.constant 0 : i32
    return %arg0, %c0_i32 : i32, i32
  }
}

</mosaic_0001>

<bundles_post_ra>
// kernel: tpu_custom_call.1
= control target key start
LH: loop header
LB: loop body
LE: loop exit
PB: predicated region body
PF: predicated region fallthrough
CT: control target
= control target key end

     0   :  { %vm38_vm0 = vcmask 261120   ;;  %v2133_v0 = vmov 0.0|0.0   ;;  %vm2134_vm1 = vmmov 0   ;;  %v2135_v4 = vmov 0.0   ;;  %s2390_s1 = inlined_call_operand.vmem [shape: f32[32,64], index: 1, kind: input, shape index: {}]   ;;  %s2391_s0 = inlined_call_operand.vmem [shape: f32[8,32], index: 0, kind: input, shape index: {}]   ;;  %s2392_s3 = inlined_call_operand.vmem [shape: f32[64,32], index: 3, kind: input, shape index: {}]   ;;  %s2393_s2 = inlined_call_operand.vmem [shape: f32[1,64], index: 2, kind: input, shape index: {}]   ;;  %s2394_s5 = inlined_call_operand.vmem [shape: f32[32,2], index: 5, kind: input, shape index: {}]   ;;  %s2395_s4 = inlined_call_operand.vmem [shape: f32[1,32], index: 4, kind: input, shape index: {}]   ;;  %s2396_s6 = inlined_call_operand.vmem [shape: f32[1,2], index: 6, kind: input, shape index: {}]   ;;  %s2397_s7 = inlined_call_operand.vmem [shape: f32[8,2], index: 7, kind: output, shape index: {}]  }
   0x1   :  { %1953 = vmatprep.subr.bf16.mxu0 %v2133_v0  ;;  %v27_v1 = vld [vmem:[%s2390_s1] sm:$0xff]  ;;  %v28_v2 = vld [vmem:[%s2390_s1 + $0x8] sm:$0xff]  ;;  %v29_v3 = vld [vmem:[%s2390_s1 + $0x10] sm:$0xff]  ;;  %1715 = vmatprep.mubr.msk.f32.mxu0 %vm2134_vm1, %v2135_v4  ;;  %vm543_vm2 = vcmask 523264   ;;  %vm1584_vm3 = vcmask 15360  }
   0x2   :  { %v43_v5 = vand.u32 4294901760, %v27_v1  ;;  %v46_v6 = vand.u32 4294901760, %v28_v2  ;;  %v30_v7 = vld [vmem:[%s2390_s1 + $0x18] sm:$0xff]  ;;  %v49_v8 = vand.u32 4294901760, %v29_v3  ;;  %v26_v9 = vld [vmem:[%s2391_s0] sm:$0xff]  ;;  %1989 = vmatprep.subr.bf16.mxu1 %v2133_v0  ;;  %1789 = vmatprep.mubr.msk.f32.mxu1 %vm2134_vm1, %v2135_v4  ;;  %v529_v42 = vld [vmem:[%s2392_s3 + $0x8] sm:$0xff] }
   0x3   :  { %v52_v10 = vand.u32 4294901760, %v30_v7  ;;  %v40_v11 = vsel %vm38_vm0, %v26_v9, 0  ;;  %v528_v41 = vld [vmem:[%s2392_s3] sm:$0xff]  ;;  %v551_v44 = vand.u32 4294901760, %v529_v42  ;;  %v530_v46 = vld [vmem:[%s2392_s3 + $0x10] sm:$0xff]  ;;  %v531_v47 = vld [vmem:[%s2392_s3 + $0x18] sm:$0xff] }
   0x4   :  { %v1954_v12 = vpack.c.bf16 %v46_v6, %v43_v5  ;;  %v123_v13 = vsub.f32 %v27_v1, %v43_v5  ;;  %v130_v14 = vsub.f32 %v28_v2, %v46_v6  ;;  %v137_v15 = vsub.f32 %v29_v3, %v49_v8  ;;  %v532_v51 = vld [vmem:[%s2392_s3 + $0x20] sm:$0xff]  ;;  %v533_v52 = vld [vmem:[%s2392_s3 + $0x28] sm:$0xff]  ;;  %v534_v58 = vld [vmem:[%s2392_s3 + $0x30] sm:$0xff] }
   0x5   :  { %v144_v16 = vsub.f32 %v30_v7, %v52_v10  ;;  %v111_v17 = vand.u32 4294901760, %v40_v11  ;;  %v1957_v18 = vpack.c.bf16 %v52_v10, %v49_v8  ;;  %v548_v43 = vand.u32 4294901760, %v528_v41  ;;  %v535_v59 = vld [vmem:[%s2392_s3 + $0x38] sm:$0xff] }
   0x6   :  { %1955 = vmatpush3.bf16.msra.mxu0 %v1954_v12  ;;  %v124_v19 = vand.u32 4294901760, %v123_v13  ;;  %v131_v20 = vand.u32 4294901760, %v130_v14  ;;  %v138_v21 = vand.u32 4294901760, %v137_v15  ;;  %v1966_v37 = vpack.c.bf16 %v130_v14, %v123_v13 }
   0x7   :  { %1956 = vmatprep.subr.bf16.mxu0 %v2133_v0  ;;  %v112_v22 = vsub.f32 %v40_v11, %v111_v17  ;;  %v145_v23 = vand.u32 4294901760, %v144_v16  ;;  %v1969_v38 = vpack.c.bf16 %v144_v16, %v137_v15  ;;  %v2228_v45 = vpack.c.bf16 %v551_v44, %v548_v43 }
   0x8   :  { %v125_v24 = vsub.f32 %v123_v13, %v124_v19  ;;  %v132_v25 = vsub.f32 %v130_v14, %v131_v20  ;;  %v139_v26 = vsub.f32 %v137_v15, %v138_v21  ;;  %v1978_v39 = vpack.c.bf16 %v131_v20, %v124_v19 }
   0x9   :  { %v113_v27 = vand.u32 4294901760, %v112_v22  ;;  %v146_v28 = vsub.f32 %v144_v16, %v145_v23  ;;  %v1981_v40 = vpack.c.bf16 %v145_v23, %v138_v21  ;;  %1991 = vmatpush3.bf16.msra.mxu1 %v2228_v45  ;;  %v554_v48 = vand.u32 4294901760, %v530_v46 }
   0xa   :  { %1958 = vmatpush3.bf16.msra.mxu0 %v1957_v18  ;;  %v126_v29 = vand.u32 4294901760, %v125_v24  ;;  %v133_v30 = vand.u32 4294901760, %v132_v25  ;;  %v140_v33 = vand.u32 4294901760, %v139_v26  ;;  %v557_v49 = vand.u32 4294901760, %v531_v47  ;;  %1992 = vmatprep.subr.bf16.mxu1 %v2133_v0 }
   0xb   :  { %v114_v31 = vsub.f32 %v112_v22, %v113_v27  ;;  %1959 = vmatprep.subr.bf16.mxu0 %v2133_v0  ;;  %v147_v34 = vand.u32 4294901760, %v146_v28  ;;  %v560_v53 = vand.u32 4294901760, %v532_v51  ;;  %v563_v54 = vand.u32 4294901760, %v533_v52 }
   0xc   :  { %v1960_v32 = vpack.c.bf16 %v133_v30, %v126_v29  ;;  %v2238_v50 = vpack.c.bf16 %v557_v49, %v554_v48  ;;  %v2248_v55 = vsub.f32 %v528_v41, %v548_v43  ;;  %v2250_v56 = vsub.f32 %v529_v42, %v551_v44  ;;  %v1590_v43 = vld [vmem:[%s2393_s2] ss:$0 sm:$0xff] }
   0xd   :  { %v115_v35 = vand.u32 4294901760, %v114_v31  ;;  %v1963_v36 = vpack.c.bf16 %v147_v34, %v140_v33  ;;  %v2252_v57 = vpack.c.bf16 %v563_v54, %v560_v53  ;;  %v2260_v60 = vsub.f32 %v530_v46, %v554_v48 }
   0xe   :  { %1994 = vmatpush3.bf16.msra.mxu1 %v2238_v50  ;;  %v2262_v61 = vsub.f32 %v531_v47, %v557_v49  ;;  %v2265_v62 = vsub.f32 %v532_v51, %v560_v53  ;;  %v2267_v63 = vsub.f32 %v533_v52, %v563_v54  ;;  %v566_v1 = vand.u32 4294901760, %v534_v58 }
   0xf   :  { %1716 = vmatmul.mubr.f32.vlgmr.msra.gmra.mrb[0].mxu0 %v115_v35  ;;  %1995 = vmatprep.subr.bf16.mxu1 %v2133_v0  ;;  %v569_v2 = vand.u32 4294901760, %v535_v59  ;;  %v633_v3 = vand.u32 4294901760, %v2248_v55  ;;  %v640_v5 = vand.u32 4294901760, %v2250_v56  ;;  %v2014_v35 = vpack.c.bf16 %v2250_v56, %v2248_v55 }
  0x10   :  { %1961 = vmatpush3.bf16.msra.mxu0 %v1960_v32  ;;  %1726 = vmatprep.mubr.msk.f32.mxu0 %vm2134_vm1, %v2135_v4  ;;  %v2274_v7 = vsub.f32 %v534_v58, %v566_v1  ;;  %v654_v13 = vand.u32 4294901760, %v2262_v61  ;;  %v661_v20 = vand.u32 4294901760, %v2265_v62  ;;  %v668_v21 = vand.u32 4294901760, %v2267_v63 }
  0x11   :  { %1962 = vmatprep.subr.bf16.mxu0 %v2133_v0  ;;  %v2272_v6 = vpack.c.bf16 %v569_v2, %v566_v1  ;;  %v2276_v8 = vsub.f32 %v535_v59, %v569_v2  ;;  %v634_v9 = vsub.f32 %v2248_v55, %v633_v3  ;;  %v641_v10 = vsub.f32 %v2250_v56, %v640_v5  ;;  %v1086_v56 = vld [vmem:[%s2394_s5 + $0x8] sm:$0xff] }
  0x12   :  { %1997 = vmatpush3.bf16.msra.mxu1 %v2252_v57  ;;  %v655_v16 = vsub.f32 %v2262_v61, %v654_v13  ;;  %v662_v23 = vsub.f32 %v2265_v62, %v661_v20  ;;  %v669_v24 = vsub.f32 %v2267_v63, %v668_v21  ;;  %v2044_v41 = vpack.c.bf16 %v668_v21, %v661_v20 }
  0x13   :  { %1998 = vmatprep.subr.bf16.mxu1 %v2133_v0  ;;  %v635_v11 = vand.u32 4294901760, %v634_v9  ;;  %v642_v14 = vand.u32 4294901760, %v641_v10  ;;  %v682_v28 = vand.u32 4294901760, %v2276_v8  ;;  %v1103_v59 = vand.u32 4294901760, %v1086_v56 }
  0x14   :  { %1964 = vmatpush3.bf16.msra.mxu0 %v1963_v36  ;;  %v656_v19 = vand.u32 4294901760, %v655_v16  ;;  %v663_v25 = vand.u32 4294901760, %v662_v23  ;;  %v670_v26 = vand.u32 4294901760, %v669_v24  ;;  %v2017_v36 = vpack.c.bf16 %v2262_v61, %v2260_v60  ;;  %v1591_v24 = vld [vmem:[%s2395_s4] ss:$0 sm:$0xff] }
  0x15   :  { %1965 = vmatprep.subr.bf16.mxu0 %v2133_v0  ;;  %v683_v31 = vsub.f32 %v2276_v8, %v682_v28  ;;  %v1187_v61 = vsub.f32 %v1086_v56, %v1103_v59 }
  0x16   :  { %2000 = vmatpush3.bf16.msra.mxu1 %v2272_v6  ;;  %v2008_v29 = vpack.c.bf16 %v670_v26, %v663_v25 }
  0x17   :  { %1727 = vmatmul.mubr.f32.vlgmr.msra.gmra.mrb[0].mxu0 %v111_v17  ;;  %2001 = vmatprep.subr.bf16.mxu1 %v2133_v0  ;;  %v684_v33 = vand.u32 4294901760, %v683_v31 }
  0x18   :  { %1967 = vmatpush3.bf16.msra.mxu0 %v1966_v37  ;;  %1737 = vmatprep.mubr.msk.f32.mxu0 %vm2134_vm1, %v2135_v4  ;;  %v2020_v37 = vpack.c.bf16 %v2267_v63, %v2265_v62  ;;  %v1088_v62 = vld [vmem:[%s2394_s5 + $0x18] sm:$0xff] }
  0x19   :  { %1968 = vmatprep.subr.bf16.mxu0 %v2133_v0  ;;  %v1109_v1 = vand.u32 4294901760, %v1088_v62 }
  0x1c   :  { %1970 = vmatpush3.bf16.msra.mxu0 %v1969_v38  ;;  %v2023_v38 = vpack.c.bf16 %v2276_v8, %v2274_v7 }
  0x1d   :  { %1971 = vmatprep.subr.bf16.mxu0 %v2133_v0 }
  0x1f   :  { %1738 = vmatmul.mubr.f32.vlgmr.msra.gmra.mrb[0].mxu0 %v112_v22 }
  0x20   :  { %1973 = vmatpush3.bf16.msra.mxu0 %v1954_v12  ;;  %1748 = vmatprep.mubr.msk.f32.mxu0 %vm2134_vm1, %v2135_v4 }
  0x21   :  { %1974 = vmatprep.subr.bf16.mxu0 %v2133_v0 }
  0x24   :  { %1976 = vmatpush3.bf16.msra.mxu0 %v1957_v18 }
  0x25   :  { %1977 = vmatprep.subr.bf16.mxu0 %v2133_v0 }
  0x27   :  { %1749 = vmatmul.mubr.f32.vlgmr.msra.gmra.mrb[0].mxu0 %v113_v27  ;;  %v675_v27 = vand.u32 4294901760, %v2274_v7 }
  0x28   :  { %1979 = vmatpush3.bf16.msra.mxu0 %v1978_v39  ;;  %1759 = vmatprep.mubr.msk.f32.mxu0 %vm2134_vm1, %v2135_v4  ;;  %v2038_v39 = vpack.c.bf16 %v640_v5, %v633_v3  ;;  %v1188_v3 = vand.u32 4294901760, %v1187_v61 }
  0x29   :  { %1980 = vmatprep.subr.bf16.mxu0 %v2133_v0  ;;  %v676_v30 = vsub.f32 %v2274_v7, %v675_v27  ;;  %v2047_v42 = vpack.c.bf16 %v682_v28, %v675_v27  ;;  %v1201_v7 = vsub.f32 %v1088_v62, %v1109_v1 }
  0x2a   :  { %v1189_v9 = vsub.f32 %v1187_v61, %v1188_v3 }
  0x2b   :  { %v677_v32 = vand.u32 4294901760, %v676_v30 }
  0x2c   :  { %1982 = vmatpush3.bf16.msra.mxu0 %v1981_v40 }
  0x2d   :  { %1983 = vmatprep.subr.bf16.mxu0 %v2133_v0  ;;  %v2011_v34 = vpack.c.bf16 %v684_v33, %v677_v32 }
  0x2f   :  { %1760 = vmatmul.mubr.f32.vlgmr.msra.gmra.mrb[0].mxu0 %v111_v17 }
  0x30   :  { %1985 = vmatpush3.bf16.msra.mxu0 %v1954_v12  ;;  %1770 = vmatprep.mubr.msk.f32.mxu0 %vm2134_vm1, %v2135_v4  ;;  %v647_v12 = vand.u32 4294901760, %v2260_v60 }
  0x31   :  { %1986 = vmatprep.subr.bf16.mxu0 %v2133_v0 }
  0x32   :  { %v648_v15 = vsub.f32 %v2260_v60, %v647_v12  ;;  %v2041_v40 = vpack.c.bf16 %v654_v13, %v647_v12  ;;  %v1202_v12 = vand.u32 4294901760, %v1201_v7  ;;  %v1190_v13 = vand.u32 4294901760, %v1189_v9 }
  0x34   :  { %1988 = vmatpush3.bf16.msra.mxu0 %v1957_v18  ;;  %v649_v18 = vand.u32 4294901760, %v648_v15  ;;  %v1203_v15 = vsub.f32 %v1201_v7, %v1202_v12 }
  0x35   :  { %2061 = vmatprep.subr.bf16.mxu0 %v2133_v0 }
  0x36   :  { %v2005_v22 = vpack.c.bf16 %v656_v19, %v649_v18  ;;  %v1204_v18 = vand.u32 4294901760, %v1203_v15 }
  0x37   :  { %1771 = vmatmul.mubr.f32.vlgmr.msra.gmra.mrb[0].mxu0 %v111_v17  ;;  %v2002_v17 = vpack.c.bf16 %v642_v14, %v635_v11 }
  0x38   :  { %1895 = vmatprep.mubr.msk.f32.mxu0 %vm2134_vm1, %v2135_v4 }
 0x10a   :  { %v523_v44 = vpop.f32.mrb[0].mxu0 }
 0x10b   :  { %v2097_v46 = vadd.f32 %v1590_v43, %v523_v44  ;;  %v1772_v47 = vpop.f32.mrb[1].mxu0 }
 0x10d   :  { %v527_v48 = vmax.f32 %v2097_v46, 0.0 }
 0x10f   :  { %v545_v49 = vsel %vm543_vm2, %v527_v48, 0 }
 0x110   :  { %v620_v51 = vand.u32 4294901760, %v545_v49 }
 0x112   :  { %v621_v52 = vsub.f32 %v545_v49, %v620_v51 }
 0x114   :  { %v622_v53 = vand.u32 4294901760, %v621_v52 }
 0x116   :  { %v623_v54 = vsub.f32 %v621_v52, %v622_v53 }
 0x118   :  { %v624_v55 = vand.u32 4294901760, %v623_v54 }
 0x11a   :  { %1790 = vmatmul.mubr.f32.vlgmr.msra.gmra.mrb[0].mxu1 %v624_v55 }
 0x11b   :  { %2003 = vmatpush3.bf16.msra.mxu1 %v2002_v17  ;;  %1808 = vmatprep.mubr.msk.f32.mxu1 %vm2134_vm1, %v2135_v4 }
 0x11c   :  { %2004 = vmatprep.subr.bf16.mxu1 %v2133_v0 }
 0x11f   :  { %2006 = vmatpush3.bf16.msra.mxu1 %v2005_v22 }
 0x120   :  { %2007 = vmatprep.subr.bf16.mxu1 %v2133_v0 }
 0x123   :  { %2009 = vmatpush3.bf16.msra.mxu1 %v2008_v29 }
 0x124   :  { %2010 = vmatprep.subr.bf16.mxu1 %v2133_v0 }
 0x127   :  { %2012 = vmatpush3.bf16.msra.mxu1 %v2011_v34 }
 0x128   :  { %2013 = vmatprep.subr.bf16.mxu1 %v2133_v0 }
 0x12a   :  { %1809 = vmatmul.mubr.f32.vlgmr.msra.gmra.mrb[0].mxu1 %v620_v51 }
 0x12b   :  { %2015 = vmatpush3.bf16.msra.mxu1 %v2014_v35  ;;  %1827 = vmatprep.mubr.msk.f32.mxu1 %vm2134_vm1, %v2135_v4  ;;  %v1592_v35 = vld [vmem:[%s2396_s6] ss:$0 sm:$0xff] }
 0x12c   :  { %2016 = vmatprep.subr.bf16.mxu1 %v2133_v0 }
 0x12f   :  { %2018 = vmatpush3.bf16.msra.mxu1 %v2017_v36 }
 0x130   :  { %2019 = vmatprep.subr.bf16.mxu1 %v2133_v0 }
 0x133   :  { %2021 = vmatpush3.bf16.msra.mxu1 %v2020_v37 }
 0x134   :  { %2022 = vmatprep.subr.bf16.mxu1 %v2133_v0 }
 0x137   :  { %2024 = vmatpush3.bf16.msra.mxu1 %v2023_v38 }
 0x138   :  { %2025 = vmatprep.subr.bf16.mxu1 %v2133_v0 }
 0x13a   :  { %1828 = vmatmul.mubr.f32.vlgmr.msra.gmra.mrb[0].mxu1 %v621_v52 }
 0x13b   :  { %2027 = vmatpush3.bf16.msra.mxu1 %v2228_v45  ;;  %1846 = vmatprep.mubr.msk.f32.mxu1 %vm2134_vm1, %v2135_v4 }
 0x13c   :  { %2028 = vmatprep.subr.bf16.mxu1 %v2133_v0 }
 0x13f   :  { %2030 = vmatpush3.bf16.msra.mxu1 %v2238_v50 }
 0x140   :  { %2031 = vmatprep.subr.bf16.mxu1 %v2133_v0 }
 0x143   :  { %2033 = vmatpush3.bf16.msra.mxu1 %v2252_v57 }
 0x144   :  { %2034 = vmatprep.subr.bf16.mxu1 %v2133_v0 }
 0x147   :  { %2036 = vmatpush3.bf16.msra.mxu1 %v2272_v6 }
 0x148   :  { %2037 = vmatprep.subr.bf16.mxu1 %v2133_v0 }
 0x14a   :  { %1847 = vmatmul.mubr.f32.vlgmr.msra.gmra.mrb[0].mxu1 %v622_v53 }
 0x14b   :  { %2039 = vmatpush3.bf16.msra.mxu1 %v2038_v39  ;;  %1865 = vmatprep.mubr.msk.f32.mxu1 %vm2134_vm1, %v2135_v4 }
 0x14c   :  { %2040 = vmatprep.subr.bf16.mxu1 %v2133_v0 }
 0x14f   :  { %2042 = vmatpush3.bf16.msra.mxu1 %v2041_v40 }
 0x150   :  { %2043 = vmatprep.subr.bf16.mxu1 %v2133_v0 }
 0x153   :  { %2045 = vmatpush3.bf16.msra.mxu1 %v2044_v41 }
 0x154   :  { %2046 = vmatprep.subr.bf16.mxu1 %v2133_v0 }
 0x157   :  { %2048 = vmatpush3.bf16.msra.mxu1 %v2047_v42 }
 0x158   :  { %2049 = vmatprep.subr.bf16.mxu1 %v2133_v0 }
 0x15a   :  { %1866 = vmatmul.mubr.f32.vlgmr.msra.gmra.mrb[0].mxu1 %v620_v51 }
 0x15b   :  { %2051 = vmatpush3.bf16.msra.mxu1 %v2228_v45  ;;  %1884 = vmatprep.mubr.msk.f32.mxu1 %vm2134_vm1, %v2135_v4  ;;  %v1085_v45 = vld [vmem:[%s2394_s5] sm:$0xff] }
 0x15c   :  { %2052 = vmatprep.subr.bf16.mxu1 %v2133_v0  ;;  %v1100_v58 = vand.u32 4294901760, %v1085_v45 }
 0x15e   :  { %v1180_v60 = vsub.f32 %v1085_v45, %v1100_v58 }
 0x15f   :  { %2054 = vmatpush3.bf16.msra.mxu1 %v2238_v50  ;;  %v2348_v50 = vpack.c.bf16 %v1103_v59, %v1100_v58 }
 0x160   :  { %2055 = vmatprep.subr.bf16.mxu1 %v2133_v0  ;;  %v1181_v2 = vand.u32 4294901760, %v1180_v60  ;;  %v2074_v20 = vpack.c.bf16 %v1187_v61, %v1180_v60 }
 0x161   :  { %2063 = vmatpush3.bf16.msra.mxu0 %v2348_v50 }
 0x162   :  { %2064 = vmatprep.subr.bf16.mxu0 %v2133_v0  ;;  %v1182_v8 = vsub.f32 %v1180_v60, %v1181_v2  ;;  %v2086_v22 = vpack.c.bf16 %v1188_v3, %v1181_v2 }
 0x163   :  { %2057 = vmatpush3.bf16.msra.mxu1 %v2252_v57  ;;  %v1087_v57 = vld [vmem:[%s2394_s5 + $0x10] sm:$0xff] }
 0x164   :  { %2058 = vmatprep.subr.bf16.mxu1 %v2133_v0  ;;  %v1106_v63 = vand.u32 4294901760, %v1087_v57  ;;  %v1183_v10 = vand.u32 4294901760, %v1182_v8 }
 0x166   :  { %v2065_v5 = vpack.c.bf16 %v1109_v1, %v1106_v63  ;;  %v2068_v16 = vpack.c.bf16 %v1190_v13, %v1183_v10 }
 0x167   :  { %2060 = vmatpush3.bf16.msra.mxu1 %v2272_v6  ;;  %v1194_v6 = vsub.f32 %v1087_v57, %v1106_v63 }
 0x168   :  { %2066 = vmatpush3.bf16.msra.mxu0 %v2065_v5 }
 0x169   :  { %v1195_v11 = vand.u32 4294901760, %v1194_v6  ;;  %2067 = vmatprep.subr.bf16.mxu0 %v2133_v0  ;;  %v2077_v21 = vpack.c.bf16 %v1201_v7, %v1194_v6 }
 0x16a   :  { %1885 = vmatmul.mubr.f32.vlgmr.msra.gmra.mrb[0].mxu1 %v620_v51 }
 0x16b   :  { %v1196_v14 = vsub.f32 %v1194_v6, %v1195_v11  ;;  %v2089_v23 = vpack.c.bf16 %v1202_v12, %v1195_v11 }
 0x16d   :  { %v1197_v17 = vand.u32 4294901760, %v1196_v14 }
 0x16f   :  { %v2071_v19 = vpack.c.bf16 %v1204_v18, %v1197_v17 }
 0x23d   :  { %v1080_v25 = vpop.f32.mrb[0].mxu1 }
 0x23e   :  { %v2098_v26 = vadd.f32 %v1591_v24, %v1080_v25  ;;  %v1886_v27 = vpop.f32.mrb[1].mxu1 }
 0x240   :  { %v1084_v28 = vmax.f32 %v2098_v26, 0.0 }
 0x242   :  { %v1097_v29 = vsel %vm38_vm0, %v1084_v28, 0 }
 0x243   :  { %v1168_v30 = vand.u32 4294901760, %v1097_v29 }
 0x245   :  { %v1169_v31 = vsub.f32 %v1097_v29, %v1168_v30 }
 0x247   :  { %v1170_v32 = vand.u32 4294901760, %v1169_v31 }
 0x249   :  { %v1171_v33 = vsub.f32 %v1169_v31, %v1170_v32 }
 0x24b   :  { %v1172_v34 = vand.u32 4294901760, %v1171_v33 }
 0x24d   :  { %1896 = vmatmul.mubr.f32.vlgmr.msra.gmra.mrb[2].mxu0 %v1172_v34 }
 0x24e   :  { %2069 = vmatpush3.bf16.msra.mxu0 %v2068_v16  ;;  %1906 = vmatprep.mubr.msk.f32.mxu0 %vm2134_vm1, %v2135_v4 }
 0x24f   :  { %2070 = vmatprep.subr.bf16.mxu0 %v2133_v0 }
 0x252   :  { %2072 = vmatpush3.bf16.msra.mxu0 %v2071_v19 }
 0x253   :  { %2073 = vmatprep.subr.bf16.mxu0 %v2133_v0 }
 0x255   :  { %1907 = vmatmul.mubr.f32.vlgmr.msra.gmra.mrb[2].mxu0 %v1168_v30 }
 0x256   :  { %2075 = vmatpush3.bf16.msra.mxu0 %v2074_v20  ;;  %1917 = vmatprep.mubr.msk.f32.mxu0 %vm2134_vm1, %v2135_v4 }
 0x257   :  { %2076 = vmatprep.subr.bf16.mxu0 %v2133_v0 }
 0x25a   :  { %2078 = vmatpush3.bf16.msra.mxu0 %v2077_v21 }
 0x25b   :  { %2079 = vmatprep.subr.bf16.mxu0 %v2133_v0 }
 0x25d   :  { %1918 = vmatmul.mubr.f32.vlgmr.msra.gmra.mrb[2].mxu0 %v1169_v31 }
 0x25e   :  { %2081 = vmatpush3.bf16.msra.mxu0 %v2348_v50  ;;  %1928 = vmatprep.mubr.msk.f32.mxu0 %vm2134_vm1, %v2135_v4 }
 0x25f   :  { %2082 = vmatprep.subr.bf16.mxu0 %v2133_v0 }
 0x262   :  { %2084 = vmatpush3.bf16.msra.mxu0 %v2065_v5 }
 0x263   :  { %2085 = vmatprep.subr.bf16.mxu0 %v2133_v0 }
 0x265   :  { %1929 = vmatmul.mubr.f32.vlgmr.msra.gmra.mrb[2].mxu0 %v1170_v32 }
 0x266   :  { %2087 = vmatpush3.bf16.msra.mxu0 %v2086_v22  ;;  %1939 = vmatprep.mubr.msk.f32.mxu0 %vm2134_vm1, %v2135_v4 }
 0x267   :  { %2088 = vmatprep.subr.bf16.mxu0 %v2133_v0 }
 0x26a   :  { %2090 = vmatpush3.bf16.msra.mxu0 %v2089_v23 }
 0x26b   :  { %2091 = vmatprep.subr.bf16.mxu0 %v2133_v0 }
 0x26d   :  { %1940 = vmatmul.mubr.f32.vlgmr.msra.gmra.mrb[2].mxu0 %v1168_v30 }
 0x26e   :  { %2093 = vmatpush3.bf16.msra.mxu0 %v2348_v50  ;;  %1950 = vmatprep.mubr.msk.f32.mxu0 %vm2134_vm1, %v2135_v4 }
 0x26f   :  { %2094 = vmatprep.subr.bf16.mxu0 %v2133_v0 }
 0x272   :  { %2096 = vmatpush3.bf16.msra.mxu0 %v2065_v5 }
 0x275   :  { %1951 = vmatmul.mubr.f32.vlgmr.msra.gmra.mrb[2].mxu0 %v1168_v30 }
 0x348   :  { %v1580_v36 = vpop.f32.mrb[2].mxu0 }
 0x349   :  { %v2099_v37 = vadd.f32 %v1592_v35, %v1580_v36  ;;  %v1952_v38 = vpop.f32.mrb[3].mxu0 }
 0x34b   :  { %1585 = vst.msk [vmem:[%s2397_s7] sm:$0xff] %vm1584_vm3, %v2099_v37 }

</bundles_post_ra>
